<compile_context>
chip_gen: v5e
topology: v5e:2x2
jax: 0.10.0
libtpu: 0.0.40
codegen_flags: <defaults>
</compile_context>

<pallas_src>
import functools
import re

import jax
import jax.numpy as jnp
from jax.experimental import pallas as pl
from jax.experimental.pallas import tpu as pltpu


# ----------------------------- Pallas kernels ------------------------------ #

def _linear_kernel(x_ref, w_ref, b_ref, o_ref):
    # y = x @ W + b   (f32 accumulation on the MXU, bias add in f32)
    x = x_ref[...].astype(w_ref.dtype)            # no-op when dtypes match
    y = jnp.dot(x, w_ref[...], preferred_element_type=jnp.float32)
    o_ref[...] = (y + b_ref[...]).astype(o_ref.dtype)


def _mlp_kernel(x_ref, w1_ref, b1_ref, w2_ref, b2_ref, o_ref, h_ref):
    # h = SiLU(x @ W1 + b1) computed once per M tile (at j == 0) into VMEM
    # scratch, then reused across all N tiles: y = h @ W2[:, j] + b2[:, j].
    @pl.when(pl.program_id(1) == 0)
    def _():
        x = x_ref[...].astype(w1_ref.dtype)
        h = jnp.dot(x, w1_ref[...], preferred_element_type=jnp.float32)
        h = h + b1_ref[...]
        h = h * jax.nn.sigmoid(h)                 # SiLU (EUP sigmoid + VPU mul)
        h_ref[...] = h.astype(h_ref.dtype)

    y = jnp.dot(h_ref[...], w2_ref[...], preferred_element_type=jnp.float32)
    o_ref[...] = (y + b2_ref[...]).astype(o_ref.dtype)


# ------------------------------ helpers ------------------------------------ #

def _round_up(x, m):
    return (x + m - 1) // m * m


@functools.lru_cache(maxsize=None)
def _tpu_generation():
    try:
        kind = jax.devices()[0].device_kind.lower()
    except Exception:
        return 0
    m = re.search(r"v(\d+)", kind)
    return int(m.group(1)) if m else 0


def _default_tile_m():
    # v6e: 128 MiB VMEM -> bigger M tiles amortize per-step overhead.
    # v7x (64 MiB VMEM) and v5e (1 vst slot): keep 512.
    return 1024 if _tpu_generation() == 6 else 512


def _choose_tile_m(m8, target):
    """Row tile (multiple of 8).  Only v7x (2 TensorCores/chip) benefits from
    splitting a small problem into >=2 grid steps; on v5e/v6e that split is
    pure per-step overhead, so keep a single tile there."""
    if m8 >= 2 * target:
        return target
    if _tpu_generation() >= 7 and m8 >= 16:
        return _round_up(pl.cdiv(m8, 2), 8)
    return min(m8, target)


def _choose_tile_n(dp, target=512):
    """Output-dim tile: lane-dense, divides Dp, keeps MXU N >= 128."""
    if dp <= target:
        return dp
    for tn in (512, 384, 256, 128):
        if tn <= target and dp % tn == 0:
            return tn
    return 128


def _pad2d(a, rows, cols):
    r, c = a.shape
    if r == rows and c == cols:
        return a
    return jnp.pad(a, ((0, rows - r), (0, cols - c)))


def _pad_rows_and_lanes(x2d, m8, cp):
    m, c = x2d.shape
    if m == m8 and c == cp:          # fast path: no HBM round-trip
        return x2d
    return jnp.pad(x2d, ((0, m8 - m), (0, cp - c)))


def _vmem_limit(nbytes_estimate):
    # Keep headroom for compiler-internal scratch: cap below physical VMEM.
    cap = (56 << 20) if _tpu_generation() >= 7 else (100 << 20)
    return int(min(max(int(1.5 * nbytes_estimate), 16 << 20), cap))


def _single_buffered_spec(block_shape, index_map):
    """Single-buffer a block whose index_map is constant over the whole grid
    (weights): the second pipeline buffer would be dead VMEM."""
    try:
        return pl.BlockSpec(block_shape, index_map,
                            pipeline_mode=pl.Buffered(buffer_count=1))
    except (TypeError, AttributeError):
        return pl.BlockSpec(block_shape, index_map)


# ------------------------------ pallas_call glue ---------------------------- #

def _pallas_linear(x2d, wp, bp, *, out_dim, tile_m):
    """y = x2d @ wp + bp with pre-padded weights.  Returns (M, out_dim)."""
    M, _ = x2d.shape
    Cp, Dp = wp.shape
    out_dtype = x2d.dtype

    M8 = _round_up(M, 8)
    xq = _pad_rows_and_lanes(x2d, M8, Cp)

    tm = _choose_tile_m(M8, tile_m)
    tn = _choose_tile_n(Dp)
    grid = (pl.cdiv(M8, tm), Dp // tn)

    xb = jnp.dtype(x2d.dtype).itemsize
    wb = jnp.dtype(wp.dtype).itemsize
    ob = jnp.dtype(out_dtype).itemsize
    est = (2 * tm * Cp * xb          # x tiles (double buffered)
           + 2 * Cp * tn * wb        # weight tiles
           + 2 * tn * 4              # bias tiles
           + 2 * tm * tn * ob)       # output tiles

    cost = pl.CostEstimate(
        flops=2 * M8 * Cp * Dp,
        transcendentals=0,
        bytes_accessed=M8 * Cp * xb + Cp * Dp * wb + Dp * 4 + M8 * Dp * ob)

    yp = pl.pallas_call(
        _linear_kernel,
        out_shape=jax.ShapeDtypeStruct((M8, Dp), out_dtype),
        grid_spec=pl.GridSpec(
            grid=grid,
            in_specs=[
                pl.BlockSpec((tm, Cp), lambda i, j: (i, 0)),
                pl.BlockSpec((Cp, tn), lambda i, j: (0, j)),
                pl.BlockSpec((1, tn), lambda i, j: (0, j)),
            ],
            out_specs=pl.BlockSpec((tm, tn), lambda i, j: (i, j)),
        ),
        compiler_params=pltpu.CompilerParams(
            dimension_semantics=("parallel", "arbitrary"),
            vmem_limit_bytes=_vmem_limit(est)),
        cost_estimate=cost,
    )(xq, wp, bp)

    if M8 != M or Dp != out_dim:
        yp = yp[:M, :out_dim]
    return yp


def _pallas_mlp(x2d, w1p, b1p, w2p, b2p, *, out_dim, tile_m):
    """y = SiLU(x2d @ w1p + b1p) @ w2p + b2p (fused).  Returns (M, out_dim)."""
    M, _ = x2d.shape
    Cp, Dp = w1p.shape
    out_dtype = x2d.dtype

    M8 = _round_up(M, 8)
    xq = _pad_rows_and_lanes(x2d, M8, Cp)

    tm = _choose_tile_m(M8, tile_m)
    tn = _choose_tile_n(Dp)
    grid = (pl.cdiv(M8, tm), Dp // tn)

    xb = jnp.dtype(x2d.dtype).itemsize
    wb = jnp.dtype(w1p.dtype).itemsize
    ob = jnp.dtype(out_dtype).itemsize
    est = (2 * tm * Cp * xb          # x tiles (double buffered)
           + 1 * Cp * Dp * wb        # W1 (single buffered, constant block)
           + 1 * Dp * 4              # b1 (single buffered, constant block)
           + 2 * Dp * tn * wb        # W2 tiles
           + 2 * tn * 4              # b2 tiles
           + tm * Dp * wb            # h scratch
           + 2 * tm * tn * ob)       # output tiles
    # TODO(synk): add K-tiling of W1 if cond_dim*output_dim ever outgrows VMEM.

    cost = pl.CostEstimate(
        flops=2 * M8 * Cp * Dp + 2 * M8 * Dp * Dp,
        transcendentals=M8 * Dp,                       # sigmoid in SiLU
        bytes_accessed=(M8 * Cp * xb + (Cp * Dp + Dp * Dp) * wb
                        + 2 * Dp * 4 + M8 * Dp * ob))

    yp = pl.pallas_call(
        _mlp_kernel,
        out_shape=jax.ShapeDtypeStruct((M8, Dp), out_dtype),
        grid_spec=pltpu.PrefetchScalarGridSpec(
            num_scalar_prefetch=0,
            grid=grid,
            in_specs=[
                pl.BlockSpec((tm, Cp), lambda i, j: (i, 0)),
                _single_buffered_spec((Cp, Dp), lambda i, j: (0, 0)),
                _single_buffered_spec((1, Dp), lambda i, j: (0, 0)),
                pl.BlockSpec((Dp, tn), lambda i, j: (0, j)),
                pl.BlockSpec((1, tn), lambda i, j: (0, j)),
            ],
            out_specs=pl.BlockSpec((tm, tn), lambda i, j: (i, j)),
            scratch_shapes=[pltpu.VMEM((tm, Dp), w1p.dtype)],  # h, reused over j
        ),
        compiler_params=pltpu.CompilerParams(
            dimension_semantics=("parallel", "arbitrary"),
            vmem_limit_bytes=_vmem_limit(est)),
        cost_estimate=cost,
    )(xq, w1p, b1p, w2p, b2p)

    if M8 != M or Dp != out_dim:
        yp = yp[:M, :out_dim]
    return yp


# ------------------------------ Conditioner --------------------------------- #

class Conditioner:
    """JAX/Pallas mirror of zonos.conditioning.Conditioner (forward only)."""

    def __init__(self, output_dim, name, cond_dim=None, projection="none",
                 uncond_type="none", *, key, param_dtype=jnp.float32,
                 tile_m=None):
        self.name = name
        self.output_dim = output_dim
        self.cond_dim = cond_dim = cond_dim or output_dim
        self.projection = projection
        self.param_dtype = param_dtype
        self.tile_m = tile_m if tile_m is not None else _default_tile_m()

        Cp = _round_up(cond_dim, 128)
        Dp = _round_up(output_dim, 128)

        keys = jax.random.split(key, 2)

        def init_linear(k, fan_in, fan_out):
            # PyTorch nn.Linear default init: U(-1/sqrt(fan_in), 1/sqrt(fan_in))
            kw, kb = jax.random.split(k)
            bound = float(fan_in) ** -0.5
            w = jax.random.uniform(kw, (fan_in, fan_out), jnp.float32,
                                   minval=-bound, maxval=bound).astype(param_dtype)
            b = jax.random.uniform(kb, (fan_out,), jnp.float32,
                                   minval=-bound, maxval=bound)  # bias kept f32
            return w, b

        # Zero-padding of C/D is exact for Linear -> SiLU -> Linear
        # (SiLU(0) = 0, padded bias entries are 0).  Pad + cast ONCE here.
        if projection in ("linear", "mlp"):
            self.w1, self.b1 = init_linear(keys[0], cond_dim, output_dim)
            self.w1p = _pad2d(self.w1, Cp, Dp)
            self.b1p = _pad2d(self.b1.reshape(1, -1).astype(jnp.float32), 1, Dp)
        if projection == "mlp":
            self.w2, self.b2 = init_linear(keys[1], output_dim, output_dim)
            self.w2p = _pad2d(self.w2, Dp, Dp)
            self.b2p = _pad2d(self.b2.reshape(1, -1).astype(jnp.float32), 1, Dp)

        self.uncond_vector = None
        if uncond_type == "learned":
            self.uncond_vector = jnp.zeros((output_dim,), jnp.float32)

    # Identity apply_cond: conditioning tensor is passed through directly.
    def apply_cond(self, x):
        return x

    def __call__(self, inputs):
        if inputs is None:
            assert self.uncond_vector is not None
            return self.uncond_vector.reshape(1, 1, -1)  # .view(1, 1, -1)

        cond = self.apply_cond(*inputs)  # (B, S, cond_dim)
        B, S, C = cond.shape
        x2d = cond.reshape(B * S, C)

        if self.projection == "linear":
            y2d = _pallas_linear(x2d, self.w1p, self.b1p,
                                 out_dim=self.output_dim, tile_m=self.tile_m)
        elif self.projection == "mlp":
            y2d = _pallas_mlp(x2d, self.w1p, self.b1p, self.w2p, self.b2p,
                              out_dim=self.output_dim, tile_m=self.tile_m)
        else:
            return cond  # identity

        return y2d.reshape(B, S, self.output_dim)


# ------------------------------ reference (pure JAX) ------------------------ #

def _ref_forward(cond, mod: Conditioner):
    B, S, C = cond.shape
    x = cond.reshape(B * S, C).astype(jnp.float32)
    if mod.projection == "linear":
        y = x @ mod.w1.astype(jnp.float32) + mod.b1
    elif mod.projection == "mlp":
        h = x @ mod.w1.astype(jnp.float32) + mod.b1
        h = h * jax.nn.sigmoid(h)
        y = h @ mod.w2.astype(jnp.float32) + mod.b2
    else:
        y = x
    return y.reshape(B, S, -1)


# ----------------------------------- main ----------------------------------- #

if __name__ == "__main__":
    key = jax.random.PRNGKey(0)
    k_param, k_x = jax.random.split(key)

    B, S = 2, 8
    cond_dim, output_dim = 32, 32

    x = jax.random.normal(k_x, (B, S, cond_dim), jnp.float32)

    # MLP-projection conditioner (f32 params) with a learned uncond vector
    mod = Conditioner(output_dim, "demo", cond_dim=cond_dim,
                      projection="mlp", uncond_type="learned", key=k_param)
    out = jax.block_until_ready(mod((x,)))
    assert out.shape == (B, S, output_dim), out.shape
    assert jnp.allclose(out, _ref_forward(x, mod), atol=1e-5, rtol=1e-5), \
        "mlp(f32) mismatch vs reference"

    # Linear-projection path
    mod_lin = Conditioner(output_dim, "demo_lin", cond_dim=cond_dim,
                          projection="linear", key=k_param)
    out_lin = jax.block_until_ready(mod_lin((x,)))
    assert jnp.allclose(out_lin, _ref_forward(x, mod_lin),
                        atol=1e-5, rtol=1e-5), "linear mismatch vs reference"

    # bf16-weight MLP path (MXU-friendly storage dtype; f32 accumulation).
    # NOTE: the kernel casts x to bf16 before the first matmul while the pure
    # JAX reference stays f32 -- an intentional precision trade (looser tol).
    mod_bf16 = Conditioner(output_dim, "demo_bf16", cond_dim=cond_dim,
                           projection="mlp", key=k_param,
                           param_dtype=jnp.bfloat16)
    out_bf16 = jax.block_until_ready(mod_bf16((x,)))
    assert jnp.allclose(out_bf16, _ref_forward(x, mod_bf16),
                        atol=3e-2, rtol=3e-2), "mlp(bf16) mismatch vs reference"

    # Unconditioned path (pure view)
    uncond = jax.block_until_ready(mod(None))
    assert uncond.shape == (1, 1, output_dim)

    print("KERNEL_OK")
</pallas_src>

<mosaic_0001>
module attributes {stable_mosaic.version = 11 : i64} {
  func.func @_mlp_kernel(%arg0: i32, %arg1: i32, %arg2: memref<16x128xf32, #tpu.memory_space<vmem>>, %arg3: memref<128x128xf32, #tpu.memory_space<vmem>>, %arg4: memref<1x128xf32, #tpu.memory_space<vmem>>, %arg5: memref<128x128xf32, #tpu.memory_space<vmem>>, %arg6: memref<1x128xf32, #tpu.memory_space<vmem>>, %arg7: memref<16x128xf32, #tpu.memory_space<vmem>>, %arg8: memref<16x128xf32, #tpu.memory_space<vmem>>) attributes {dimension_semantics = [#tpu.dimension_semantics<parallel>, #tpu.dimension_semantics<arbitrary>], iteration_bounds = array<i64: 1, 1>, scalar_prefetch = 0 : i64, scratch_operands = 1 : i64, tpu.core_type = #tpu.core_type<tc>, window_params = [{transform_indices = @transform_0, window_bounds = array<i64: 16, 128>}, {pipeline_mode = #tpu.pipeline_mode<synchronous>, transform_indices = @transform_1, window_bounds = array<i64: 128, 128>}, {pipeline_mode = #tpu.pipeline_mode<synchronous>, transform_indices = @transform_2, window_bounds = array<i64: 1, 128>}, {transform_indices = @transform_3, window_bounds = array<i64: 128, 128>}, {transform_indices = @transform_4, window_bounds = array<i64: 1, 128>}, {transform_indices = @transform_5, window_bounds = array<i64: 16, 128>}]} {
    %c0_i32 = arith.constant 0 : i32
    %0 = arith.cmpi eq, %arg1, %c0_i32 : i32
    %1 = arith.extui %0 : i1 to i32
    %c0_i32_0 = arith.constant 0 : i32
    %2 = arith.cmpi ne, %1, %c0_i32_0 : i32
    scf.if %2 {
      %c0_8 = arith.constant 0 : index
      %c0_9 = arith.constant 0 : index
      %10 = vector.load %arg2[%c0_8, %c0_9] : memref<16x128xf32, #tpu.memory_space<vmem>>, vector<16x128xf32>
      %c0_10 = arith.constant 0 : index
      %c0_11 = arith.constant 0 : index
      %11 = vector.load %arg3[%c0_10, %c0_11] : memref<128x128xf32, #tpu.memory_space<vmem>>, vector<128x128xf32>
      %cst_12 = arith.constant dense<0.000000e+00> : vector<16x128xf32>
      %12 = tpu.matmul %10, %11, %cst_12 {dimension_numbers = #tpu.dot_dimension_numbers<[1], [0], [0], [1], [0, 0, 1, 1], [], []>} : vector<16x128xf32>, vector<128x128xf32>, vector<16x128xf32> -> vector<16x128xf32>
      %c0_13 = arith.constant 0 : index
      %c0_14 = arith.constant 0 : index
      %13 = vector.load %arg4[%c0_13, %c0_14] : memref<1x128xf32, #tpu.memory_space<vmem>>, vector<1x128xf32>
      %14 = vector.broadcast %13 : vector<1x128xf32> to vector<16x128xf32>
      %15 = arith.addf %12, %14 : vector<16x128xf32>
      %16 = arith.negf %15 : vector<16x128xf32>
      %17 = math.exp %16 : vector<16x128xf32>
      %cst_15 = arith.constant 1.000000e+00 : f32
      %18 = vector.broadcast %cst_15 : f32 to vector<16x128xf32>
      %19 = arith.addf %18, %17 : vector<16x128xf32>
      %20 = arith.divf %18, %19 : vector<16x128xf32>
      %21 = arith.mulf %15, %20 : vector<16x128xf32>
      %c0_16 = arith.constant 0 : index
      %c0_17 = arith.constant 0 : index
      %22 = vector.load %arg8[%c0_16, %c0_17] : memref<16x128xf32, #tpu.memory_space<vmem>>, vector<16x128xf32>
      tpu.vector_store %arg8[%c0_16, %c0_17], %21 {strides = array<i32>} : memref<16x128xf32, #tpu.memory_space<vmem>>, vector<16x128xf32>,
    } else {
    }
    %c0 = arith.constant 0 : index
    %c0_1 = arith.constant 0 : index
    %3 = vector.load %arg8[%c0, %c0_1] : memref<16x128xf32, #tpu.memory_space<vmem>>, vector<16x128xf32>
    %c0_2 = arith.constant 0 : index
    %c0_3 = arith.constant 0 : index
    %4 = vector.load %arg5[%c0_2, %c0_3] : memref<128x128xf32, #tpu.memory_space<vmem>>, vector<128x128xf32>
    %cst = arith.constant dense<0.000000e+00> : vector<16x128xf32>
    %5 = tpu.matmul %3, %4, %cst {dimension_numbers = #tpu.dot_dimension_numbers<[1], [0], [0], [1], [0, 0, 1, 1], [], []>} : vector<16x128xf32>, vector<128x128xf32>, vector<16x128xf32> -> vector<16x128xf32>
    %c0_4 = arith.constant 0 : index
    %c0_5 = arith.constant 0 : index
    %6 = vector.load %arg6[%c0_4, %c0_5] : memref<1x128xf32, #tpu.memory_space<vmem>>, vector<1x128xf32>
    %7 = vector.broadcast %6 : vector<1x128xf32> to vector<16x128xf32>
    %8 = arith.addf %5, %7 : vector<16x128xf32>
    %c0_6 = arith.constant 0 : index
    %c0_7 = arith.constant 0 : index
    %9 = vector.load %arg7[%c0_6, %c0_7] : memref<16x128xf32, #tpu.memory_space<vmem>>, vector<16x128xf32>
    tpu.vector_store %arg7[%c0_6, %c0_7], %8 {strides = array<i32>} : memref<16x128xf32, #tpu.memory_space<vmem>>, vector<16x128xf32>,
    return
  }
  func.func @transform_0(%arg0: i32, %arg1: i32) -> (i32, i32) {
    %c0_i32 = arith.constant 0 : i32
    %c0_i32_0 = arith.constant 0 : i32
    return %arg0, %c0_i32 : i32, i32
  }
  func.func @transform_1(%arg0: i32, %arg1: i32) -> (i32, i32) {
    %c0_i32 = arith.constant 0 : i32
    %c0_i32_0 = arith.constant 0 : i32
    %c0_i32_1 = arith.constant 0 : i32
    return %c0_i32, %c0_i32_0 : i32, i32
  }
  func.func @transform_2(%arg0: i32, %arg1: i32) -> (i32, i32) {
    %c0_i32 = arith.constant 0 : i32
    %c0_i32_0 = arith.constant 0 : i32
    %c0_i32_1 = arith.constant 0 : i32
    return %c0_i32, %c0_i32_0 : i32, i32
  }
  func.func @transform_3(%arg0: i32, %arg1: i32) -> (i32, i32) {
    %c0_i32 = arith.constant 0 : i32
    %c0_i32_0 = arith.constant 0 : i32
    return %c0_i32, %arg1 : i32, i32
  }
  func.func @transform_4(%arg0: i32, %arg1: i32) -> (i32, i32) {
    %c0_i32 = arith.constant 0 : i32
    %c0_i32_0 = arith.constant 0 : i32
    return %c0_i32, %arg1 : i32, i32
  }
  func.func @transform_5(%arg0: i32, %arg1: i32) -> (i32, i32) {
    %c0_i32 = arith.constant 0 : i32
    return %arg0, %arg1 : i32, i32
  }
}

</mosaic_0001>

<bundles_post_ra>
// kernel: tpu_custom_call.1
= control target key start
LH: loop header
LB: loop body
LE: loop exit
PB: predicated region body
PF: predicated region fallthrough
CT: control target
= control target key end

     0   :  { %10 = vsyncpa [#allocation4], 0  ;;  %s444_s0 = inlined_call_operand.hbm [shape: f32[16,128], index: 0, kind: input, shape index: {}]   ;;  %s445_s1 = inlined_call_operand.hbm [shape: f32[128,128], index: 1, kind: input, shape index: {}]   ;;  %s446_s2 = inlined_call_operand.vmem [shape: f32[1,128], index: 2, kind: input, shape index: {}]   ;;  %s447_s3 = inlined_call_operand.hbm [shape: f32[128,128], index: 3, kind: input, shape index: {}]   ;;  %s448_s4 = inlined_call_operand.vmem [shape: f32[1,128], index: 4, kind: input, shape index: {}]   ;;  %s449_s5 = inlined_call_operand.hbm [shape: f32[16,128], index: 5, kind: output, shape index: {}]  }
   0x1   :  { %11 = vsyncpa [#allocation7], 0 }
   0x2   :  { %12 = vsyncpa [#allocation5], 0  ;;  %s30_s20 = sshll.u32 %s445_s1, 4  ;;  %s378_s21 = smov [#allocation6]   ;;  %s31_s20 = int_to_ptr.hbm [resolvable:$true] %s30_s20 }
   0x3   :  { %s32_s22 = sshll.u32 %s378_s21, 4  ;;  %s17_s25 = sshll.u32 %s444_s0, 4  ;;  %s33_s22 = int_to_ptr.vmem [resolvable:$true] %s32_s22  ;;  %s18_s25 = int_to_ptr.hbm [resolvable:$true] %s17_s25 }
   0x4   :  { %s379_s26 = smov 128   ;;  %s380_s27 = smov 8  }
   0x5   :  { %38 = dma.hbm_to_vmem [thread:$0]  %s31_s20, 2048, %s33_s22, [#allocation7], %s379_s26, %s379_s26, %s380_s27  }
   0x6   :  { %s381_s28 = smov [#allocation3]   ;;  %s45_s1 = sshll.u32 %s447_s3, 4  ;;  %s46_s1 = int_to_ptr.hbm [resolvable:$true] %s45_s1 }
   0x7   :  { %s19_s29 = sshll.u32 %s381_s28, 4  ;;  %s382_s0 = smov [#allocation8]   ;;  %s20_s29 = int_to_ptr.vmem [resolvable:$true] %s19_s29 }
   0x8   :  { %25 = dma.hbm_to_vmem [thread:$0]  %s18_s25, 256, %s20_s29, [#allocation4], %s379_s26, %s379_s26, %s380_s27  }
   0x9   :  { %s47_s7 = sshll.u32 %s382_s0, 4  ;;  %s48_s7 = int_to_ptr.vmem [resolvable:$true] %s47_s7 }
   0xa   :  { %53 = dma.hbm_to_vmem [thread:$0]  %s46_s1, 2048, %s48_s7, [#allocation7], %s379_s26, %s379_s26, %s380_s27  }
   0xb   :  { %372 = dma.done.wait [#allocation4], 256  }
   0xc   :  { %373 = vsyncadd [#allocation4], 4294967040 }
   0xd   :  { %374 = dma.done.wait [#allocation7], 4096  }
   0xe   :  { %375 = vsyncadd [#allocation7], 4294963200  ;;  %v89_v0 = vld [vmem:[#allocation6 + $0x78] sm:$0xff]  ;;  %v88_v1 = vld [vmem:[#allocation6 + $0x70] sm:$0xff]  ;;  %s383_s10 = smov [#allocation9]   ;;  %s212_s14 = sshll.u32 %s449_s5, 4  ;;  %s213_s14 = int_to_ptr.hbm [resolvable:$true] %s212_s14 }
   0xf   :  { %94 = vmatpush.msra.mxu0 %v89_v0  ;;  %228 = vmatpush.msra.mxu2 %v89_v0  ;;  %v87_v2 = vld [vmem:[#allocation6 + $0x68] sm:$0xff]  ;;  %v86_v3 = vld [vmem:[#allocation6 + $0x60] sm:$0xff]  ;;  %v85_v4 = vld [vmem:[#allocation6 + $0x58] sm:$0xff]  ;;  %s210_s11 = sshll.u32 %s383_s10, 4  ;;  %s211_s11 = int_to_ptr.vmem [resolvable:$true] %s210_s11 }
  0x10   :  { %v84_v5 = vld [vmem:[#allocation6 + $0x50] sm:$0xff]  ;;  %v83_v6 = vld [vmem:[#allocation6 + $0x48] sm:$0xff]  ;;  %v82_v7 = vld [vmem:[#allocation6 + $0x40] sm:$0xff] }
  0x11   :  { %95 = vmatpush.msra.mxu0 %v88_v1  ;;  %229 = vmatpush.msra.mxu2 %v88_v1  ;;  %v81_v8 = vld [vmem:[#allocation6 + $0x38] sm:$0xff]  ;;  %v80_v9 = vld [vmem:[#allocation6 + $0x30] sm:$0xff]  ;;  %v79_v10 = vld [vmem:[#allocation6 + $0x28] sm:$0xff] }
  0x12   :  { %v78_v11 = vld [vmem:[#allocation6 + $0x20] sm:$0xff]  ;;  %v77_v12 = vld [vmem:[#allocation6 + $0x18] sm:$0xff]  ;;  %v76_v13 = vld [vmem:[#allocation6 + $0x10] sm:$0xff] }
  0x13   :  { %96 = vmatpush.msra.mxu0 %v87_v2  ;;  %230 = vmatpush.msra.mxu2 %v87_v2  ;;  %v75_v14 = vld [vmem:[#allocation6 + $0x8] sm:$0xff]  ;;  %v74_v15 = vld [vmem:[#allocation6] sm:$0xff]  ;;  %v72_v16 = vld [vmem:[#allocation3] sm:$0xff] }
  0x14   :  { %v73_v17 = vld [vmem:[#allocation3 + $0x8] sm:$0xff]  ;;  %v175_v19 = vld [vmem:[#allocation8 + $0x70] sm:$0xff]  ;;  %v174_v20 = vld [vmem:[#allocation8 + $0x68] sm:$0xff] }
  0x15   :  { %97 = vmatpush.msra.mxu0 %v86_v3  ;;  %231 = vmatpush.msra.mxu2 %v86_v3  ;;  %v176_v18 = vld [vmem:[#allocation8 + $0x78] sm:$0xff]  ;;  %v173_v21 = vld [vmem:[#allocation8 + $0x60] sm:$0xff]  ;;  %v171_v23 = vld [vmem:[#allocation8 + $0x50] sm:$0xff] }
  0x16   :  { %181 = vmatpush.msra.mxu1 %v176_v18  ;;  %244 = vmatpush.msra.mxu3 %v176_v18  ;;  %v172_v22 = vld [vmem:[#allocation8 + $0x58] sm:$0xff]  ;;  %v170_v24 = vld [vmem:[#allocation8 + $0x48] sm:$0xff]  ;;  %v169_v25 = vld [vmem:[#allocation8 + $0x40] sm:$0xff] }
  0x17   :  { %98 = vmatpush.msra.mxu0 %v85_v4  ;;  %232 = vmatpush.msra.mxu2 %v85_v4  ;;  %v168_v26 = vld [vmem:[#allocation8 + $0x38] sm:$0xff]  ;;  %v167_v27 = vld [vmem:[#allocation8 + $0x30] sm:$0xff]  ;;  %v166_v28 = vld [vmem:[#allocation8 + $0x28] sm:$0xff] }
  0x18   :  { %182 = vmatpush.msra.mxu1 %v175_v19  ;;  %245 = vmatpush.msra.mxu3 %v175_v19  ;;  %v165_v29 = vld [vmem:[#allocation8 + $0x20] sm:$0xff]  ;;  %v164_v30 = vld [vmem:[#allocation8 + $0x18] sm:$0xff]  ;;  %v163_v31 = vld [vmem:[#allocation8 + $0x10] sm:$0xff] }
  0x19   :  { %99 = vmatpush.msra.mxu0 %v84_v5  ;;  %233 = vmatpush.msra.mxu2 %v84_v5  ;;  %v162_v32 = vld [vmem:[#allocation8 + $0x8] sm:$0xff]  ;;  %v266_v33 = vld [vmem:[%s446_s2] ss:$0 sm:$0xff]  ;;  %v161_v34 = vld [vmem:[#allocation8] sm:$0xff] }
  0x1a   :  { %183 = vmatpush.msra.mxu1 %v174_v20  ;;  %246 = vmatpush.msra.mxu3 %v174_v20  ;;  %v267_v3 = vld [vmem:[%s448_s4] ss:$0 sm:$0xff] }
  0x1b   :  { %100 = vmatpush.msra.mxu0 %v83_v6  ;;  %234 = vmatpush.msra.mxu2 %v83_v6 }
  0x1c   :  { %184 = vmatpush.msra.mxu1 %v173_v21  ;;  %247 = vmatpush.msra.mxu3 %v173_v21 }
  0x1d   :  { %101 = vmatpush.msra.mxu0 %v82_v7  ;;  %235 = vmatpush.msra.mxu2 %v82_v7 }
  0x1e   :  { %185 = vmatpush.msra.mxu1 %v172_v22  ;;  %248 = vmatpush.msra.mxu3 %v172_v22 }
  0x1f   :  { %102 = vmatpush.msra.mxu0 %v81_v8  ;;  %236 = vmatpush.msra.mxu2 %v81_v8 }
  0x20   :  { %186 = vmatpush.msra.mxu1 %v171_v23  ;;  %249 = vmatpush.msra.mxu3 %v171_v23 }
  0x21   :  { %103 = vmatpush.msra.mxu0 %v80_v9  ;;  %237 = vmatpush.msra.mxu2 %v80_v9 }
  0x22   :  { %187 = vmatpush.msra.mxu1 %v170_v24  ;;  %250 = vmatpush.msra.mxu3 %v170_v24 }
  0x23   :  { %104 = vmatpush.msra.mxu0 %v79_v10  ;;  %238 = vmatpush.msra.mxu2 %v79_v10 }
  0x24   :  { %188 = vmatpush.msra.mxu1 %v169_v25  ;;  %251 = vmatpush.msra.mxu3 %v169_v25 }
  0x25   :  { %105 = vmatpush.msra.mxu0 %v78_v11  ;;  %239 = vmatpush.msra.mxu2 %v78_v11 }
  0x26   :  { %189 = vmatpush.msra.mxu1 %v168_v26  ;;  %252 = vmatpush.msra.mxu3 %v168_v26 }
  0x27   :  { %106 = vmatpush.msra.mxu0 %v77_v12  ;;  %240 = vmatpush.msra.mxu2 %v77_v12 }
  0x28   :  { %190 = vmatpush.msra.mxu1 %v167_v27  ;;  %253 = vmatpush.msra.mxu3 %v167_v27 }
  0x29   :  { %107 = vmatpush.msra.mxu0 %v76_v13  ;;  %241 = vmatpush.msra.mxu2 %v76_v13 }
  0x2a   :  { %191 = vmatpush.msra.mxu1 %v166_v28  ;;  %254 = vmatpush.msra.mxu3 %v166_v28 }
  0x2b   :  { %108 = vmatpush.msra.mxu0 %v75_v14  ;;  %242 = vmatpush.msra.mxu2 %v75_v14 }
  0x2c   :  { %192 = vmatpush.msra.mxu1 %v165_v29  ;;  %255 = vmatpush.msra.mxu3 %v165_v29 }
  0x2d   :  { %109 = vmatpush.msra.mxu0 %v74_v15  ;;  %243 = vmatpush.msra.mxu2 %v74_v15 }
  0x2e   :  { %110 = vmatmul.f32.vlgmr.msra.gmra.mxu0 %v72_v16  ;;  %113 = vmatmul.f32.vlgmr.msra.gmra.mxu2 %v73_v17 }
  0x2f   :  { %193 = vmatpush.msra.mxu1 %v164_v30  ;;  %256 = vmatpush.msra.mxu3 %v164_v30 }
  0x31   :  { %194 = vmatpush.msra.mxu1 %v163_v31  ;;  %257 = vmatpush.msra.mxu3 %v163_v31 }
  0x33   :  { %195 = vmatpush.msra.mxu1 %v162_v32  ;;  %258 = vmatpush.msra.mxu3 %v162_v32 }
  0x35   :  { %196 = vmatpush.msra.mxu1 %v161_v34  ;;  %259 = vmatpush.msra.mxu3 %v161_v34 }
  0xab   :  { %v111_v35 = vpop.f32.mrf.mxu0 }
  0xac   :  { %v112_v36 = vadd.f32 %v266_v33, %v111_v35 }
  0xae   :  { %v226_v37 = vmul.f32 -1.442695, %v112_v36 }
  0xb0   :  { %268 = vpow2.f32 %v226_v37 }
  0xb1   :  { %v114_v38 = vpop.f32.mrf.mxu2 }
  0xb2   :  { %v115_v39 = vadd.f32 %v266_v33, %v114_v38 }
  0xb4   :  { %v227_v40 = vmul.f32 -1.442695, %v115_v39 }
  0xb6   :  { %v269_v41 = vpop.eup %268  ;;  %270 = vpow2.f32 %v227_v40 }
  0xb7   :  { %v123_v42 = vadd.f32 1.0, %v269_v41 }
  0xb9   :  { %272 = vrcp.f32 %v123_v42  ;;  %v136_v47 = vand.u32 2147483648, %v123_v42  ;;  %vm130_vm0 = vweird.f32 %v123_v42  ;;  %v134_v49 = vand.u32 2147483647, %v123_v42 }
  0xbb   :  { %v137_v52 = vor.u32 1.1754944e-38, %v136_v47  ;;  %vm135_vm3 = vcmp.eq.f32.partialorder %v134_v49, 8.507059e+37 }
  0xbc   :  { %v271_v43 = vpop.eup %270 }
  0xbd   :  { %v124_v44 = vadd.f32 1.0, %v271_v43 }
  0xbf   :  { %v273_v45 = vpop.eup %272  ;;  %274 = vrcp.f32 %v124_v44  ;;  %v151_v58 = vand.u32 2147483648, %v124_v44  ;;  %v149_v61 = vand.u32 2147483647, %v124_v44  ;;  %vm145_vm5 = vweird.f32 %v124_v44 }
  0xc0   :  { %v126_v46 = vmul.f32 %v273_v45, %v123_v42  ;;  %vm131_vm1 = vweird.f32 %v273_v45 }
  0xc1   :  { %vm132_vm2 = vmor %vm130_vm0, %vm131_vm1  ;;  %v152_v63 = vor.u32 1.1754944e-38, %v151_v58  ;;  %vm150_vm7 = vcmp.eq.f32.partialorder %v149_v61, 8.507059e+37 }
  0xc2   :  { %v127_v48 = vsub.f32 1.0, %v126_v46 }
  0xc4   :  { %v128_v50 = vmul.f32 %v273_v45, %v127_v48 }
  0xc5   :  { %v275_v51 = vpop.eup %274 }
  0xc6   :  { %v129_v53 = vadd.f32 %v273_v45, %v128_v50  ;;  %v141_v54 = vmul.f32 %v275_v51, %v124_v44  ;;  %vm146_vm4 = vweird.f32 %v275_v51 }
  0xc7   :  { %vm147_vm6 = vmor %vm145_vm5, %vm146_vm4 }
  0xc8   :  { %v133_v55 = vsel %vm132_vm2, %v273_v45, %v129_v53  ;;  %v142_v56 = vsub.f32 1.0, %v141_v54 }
  0xc9   :  { %v138_v57 = vsel %vm135_vm3, %v137_v52, %v133_v55 }
  0xca   :  { %v155_v59 = vmul.f32 %v138_v57, %v112_v36  ;;  %v143_v60 = vmul.f32 %v275_v51, %v142_v56 }
  0xcc   :  { %197 = vmatmul.f32.vlgmr.msra.gmra.mxu1 %v155_v59  ;;  %v144_v62 = vadd.f32 %v275_v51, %v143_v60 }
  0xce   :  { %v148_v0 = vsel %vm147_vm6, %v275_v51, %v144_v62 }
  0xcf   :  { %v153_v1 = vsel %vm150_vm7, %v152_v63, %v148_v0 }
  0xd0   :  { %v156_v2 = vmul.f32 %v153_v1, %v115_v39 }
  0xd2   :  { %200 = vmatmul.f32.vlgmr.msra.gmra.mxu3 %v156_v2 }
 0x149   :  { %v198_v4 = vpop.f32.mrf.mxu1 }
 0x14a   :  { %v199_v5 = vadd.f32 %v267_v3, %v198_v4 }
 0x14c   :  { %204 = vst [vmem:[#allocation9] sm:$0xff] %v199_v5 }
 0x155   :  { %v201_v6 = vpop.f32.mrf.mxu3 }
 0x156   :  { %v202_v7 = vadd.f32 %v267_v3, %v201_v6 }
 0x158   :  { %205 = vst [vmem:[#allocation9 + $0x8] sm:$0xff] %v202_v7 }
 0x159   :  { %218 = dma.vmem_to_hbm [thread:$0]  %s211_s11, 256, %s213_s14, [#allocation5], %s379_s26, %s379_s26, %s380_s27  }
 0x15a   :  { %376 = dma.done.wait [#allocation5], 256  }
 0x15b   :  { %377 = vsyncadd [#allocation5], 4294967040 }
 0x15c   :  { %223 = vsyncpa [#allocation4], 1 }
 0x15d   :  { %224 = vsyncpa [#allocation7], 1 }
 0x15e   :  { %225 = vsyncpa [#allocation5], 1 }

</bundles_post_ra>
